<compile_context>
chip_gen: v7x
topology: tpu7x:2x2x1
jax: 0.10.0
libtpu: 0.0.40
codegen_flags: <defaults>
</compile_context>

<pallas_src>
import math
import numpy as np

import jax
import jax.numpy as jnp
from jax.experimental import pallas as pl
from jax.experimental.pallas import tpu as pltpu


# ----------------------------------------------------------------------------
# helpers
# ----------------------------------------------------------------------------
def _round_up(x, m):
    return ((x + m - 1) // m) * m


def _choose_tile(padded_dim, target):
    """Largest multiple of 128 <= target that exactly divides padded_dim."""
    t = min(target, padded_dim)
    t = max(128, (t // 128) * 128)
    while padded_dim % t != 0:
        t -= 128
    return t


def _tpu_tiling_config():
    """(row/col tile target, vmem_limit_bytes) chosen per TPU generation."""
    vmem_bytes = 64 * 1024 * 1024  # conservative fallback (v7x-class)
    try:
        info = pltpu.get_tpu_info()
        vmem_bytes = int(getattr(info, "vmem_capacity_bytes", vmem_bytes))
    except Exception:
        pass
    if vmem_bytes <= 64 * 1024 * 1024:
        # v7x-class: 64 MiB physical VMEM per TensorCore.
        return 1024, 48 * 1024 * 1024
    # v5e / v6e: 128 MiB VMEM -> larger tiles for better DMA efficiency.
    return 2048, 96 * 1024 * 1024


# ----------------------------------------------------------------------------
# Kernel 1: HW = H @ W   (f32 accumulate, bf16 output)
#           optional epilogue: p = HW_f32 @ rv  (f32, faithful node selection)
#   grid = (row tiles of N_pad, K tiles over a_pad)
# ----------------------------------------------------------------------------
def _hw_kernel(h_ref, w_ref, hw_ref, acc_ref):
    k = pl.program_id(1)

    @pl.when(k == 0)
    def _():
        acc_ref[...] = jnp.zeros_like(acc_ref)

    acc_ref[...] += jnp.dot(h_ref[...], w_ref[...],
                            preferred_element_type=jnp.float32)

    @pl.when(k == pl.num_programs(1) - 1)
    def _():
        hw_ref[...] = acc_ref[...].astype(hw_ref.dtype)


def _hw_proj_kernel(h_ref, w_ref, rv_ref, hw_ref, p_ref, acc_ref):
    k = pl.program_id(1)

    @pl.when(k == 0)
    def _():
        acc_ref[...] = jnp.zeros_like(acc_ref)

    acc_ref[...] += jnp.dot(h_ref[...], w_ref[...],
                            preferred_element_type=jnp.float32)

    @pl.when(k == pl.num_programs(1) - 1)
    def _():
        hw_ref[...] = acc_ref[...].astype(hw_ref.dtype)
        # Random projection in f32 so argmax/argmin node selection matches ref.
        p_ref[...] = jnp.dot(acc_ref[...], rv_ref[...],
                             preferred_element_type=jnp.float32)


def compute_hw(H_f32, W_f32, rv_pad, *, tm, tka, vmem_limit):
    N_pad, a_pad = H_f32.shape
    b_pad = W_f32.shape[1]
    grid = (N_pad // tm, a_pad // tka)
    compiler_params = pltpu.CompilerParams(
        dimension_semantics=("parallel", "arbitrary"),
        vmem_limit_bytes=vmem_limit,
    )
    scratch = [pltpu.VMEM((tm, b_pad), jnp.float32)]

    if rv_pad is None:
        return pl.pallas_call(
            _hw_kernel,
            out_shape=jax.ShapeDtypeStruct((N_pad, b_pad), jnp.bfloat16),
            grid_spec=pltpu.PrefetchScalarGridSpec(
                num_scalar_prefetch=0,
                grid=grid,
                in_specs=[
                    pl.BlockSpec((tm, tka), lambda i, k: (i, k)),       # H tile
                    pl.BlockSpec((tka, b_pad), lambda i, k: (k, 0)),    # W slab
                ],
                out_specs=pl.BlockSpec((tm, b_pad), lambda i, k: (i, 0)),
                scratch_shapes=scratch,
            ),
            compiler_params=compiler_params,
        )(H_f32, W_f32)

    return pl.pallas_call(
        _hw_proj_kernel,
        out_shape=(jax.ShapeDtypeStruct((N_pad, b_pad), jnp.bfloat16),
                   jax.ShapeDtypeStruct((N_pad, 128), jnp.float32)),
        grid_spec=pltpu.PrefetchScalarGridSpec(
            num_scalar_prefetch=0,
            grid=grid,
            in_specs=[
                pl.BlockSpec((tm, tka), lambda i, k: (i, k)),           # H tile
                pl.BlockSpec((tka, b_pad), lambda i, k: (k, 0)),        # W slab
                pl.BlockSpec((b_pad, 128), lambda i, k: (0, 0)),        # rv
            ],
            out_specs=(pl.BlockSpec((tm, b_pad), lambda i, k: (i, 0)),
                       pl.BlockSpec((tm, 128), lambda i, k: (i, 0))),
            scratch_shapes=scratch,
        ),
        compiler_params=compiler_params,
    )(H_f32, W_f32, rv_pad)


# ----------------------------------------------------------------------------
# Kernel 2: block-sparse  A @ HW + bias
#   grid = (row tiles, max nonzero col blocks per row tile)
#   Scalar prefetch: nblk[i] = #nonzero col blocks of row tile i,
#                    colids[i*max_nblk + k] = k-th nonzero col block of tile i.
#   Empty grid steps (k >= nblk[i]) skip the MXU via pl.when.
# ----------------------------------------------------------------------------
def _spmm_bias_kernel(nblk_ref, cid_ref, a_ref, hw_ref, bias_ref, o_ref,
                      acc_ref):
    i = pl.program_id(0)
    k = pl.program_id(1)

    @pl.when(k == 0)
    def _():
        acc_ref[...] = jnp.zeros_like(acc_ref)

    @pl.when(k < nblk_ref[i])
    def _():
        acc_ref[...] += jnp.dot(a_ref[...], hw_ref[...],
                                preferred_element_type=jnp.float32)

    @pl.when(k == pl.num_programs(1) - 1)
    def _():
        # f32 bias epilogue, single unmasked lane-dense store.
        o_ref[...] = acc_ref[...] + bias_ref[...]


def block_sparse_matmul_bias(A_bf16, HW_bf16, bias_f32, nblk, colids, *,
                             tm, tk, max_nblk, vmem_limit):
    N_pad = A_bf16.shape[0]
    b_pad = HW_bf16.shape[1]
    grid = (N_pad // tm, max_nblk)

    def a_map(i, k, nblk_r, cid_r):
        return (i, cid_r[i * max_nblk + k])

    def hw_map(i, k, nblk_r, cid_r):
        return (cid_r[i * max_nblk + k], 0)

    return pl.pallas_call(
        _spmm_bias_kernel,
        out_shape=jax.ShapeDtypeStruct((N_pad, b_pad), jnp.float32),
        grid_spec=pltpu.PrefetchScalarGridSpec(
            num_scalar_prefetch=2,
            grid=grid,
            in_specs=[
                pl.BlockSpec((tm, tk), a_map),                          # A tile
                pl.BlockSpec((tk, b_pad), hw_map),                      # HW tile
                pl.BlockSpec((1, b_pad), lambda i, k, n, c: (0, 0)),    # bias
            ],
            out_specs=pl.BlockSpec((tm, b_pad), lambda i, k, n, c: (i, 0)),
            scratch_shapes=[pltpu.VMEM((tm, b_pad), jnp.float32)],
        ),
        compiler_params=pltpu.CompilerParams(
            dimension_semantics=("parallel", "arbitrary"),
            vmem_limit_bytes=vmem_limit,
        ),
    )(nblk, colids, A_bf16, HW_bf16, bias_f32)


# ----------------------------------------------------------------------------
# Host-side block-structure extraction (nonzero (tm,tk) tiles of A)
# ----------------------------------------------------------------------------
def block_structure(A, N_pad, tm, tk):
    N = A.shape[0]
    n_row_tiles = N_pad // tm
    n_col_tiles = N_pad // tk
    nblk = np.zeros((n_row_tiles,), np.int32)
    per_row = []
    for i in range(n_row_tiles):
        r0, r1 = i * tm, min((i + 1) * tm, N)
        blocks = []
        if r0 < N:
            for j in range(n_col_tiles):
                c0, c1 = j * tk, min((j + 1) * tk, N)
                if c0 < N and np.any(A[r0:r1, c0:c1]):
                    blocks.append(j)
        if not blocks:
            blocks = [min(i, n_col_tiles - 1)]  # defensive; compute is skipped
            nblk[i] = 0
        else:
            nblk[i] = len(blocks)
        per_row.append(blocks)
    max_nblk = max(1, int(max(len(b) for b in per_row)))
    colids = np.zeros((n_row_tiles, max_nblk), np.int32)
    for i, blocks in enumerate(per_row):
        colids[i, :len(blocks)] = blocks
        colids[i, len(blocks):] = blocks[-1]
    return nblk, colids.reshape(-1), max_nblk


# ----------------------------------------------------------------------------
# Host-side hypergraph -> graph approximation (faithful to the PyTorch code,
# but consuming the device-computed projection p and producing a dense
# symmetrically-normalized adjacency).
# ----------------------------------------------------------------------------
def _accumulate(weights, key, val):
    weights[key] = weights.get(key, 0.0) + val


def laplacian_dense(V, E, p, m):
    """Dense equivalent of Laplacian() + adjacency() + symnormalise()."""
    edges, weights = [], {}
    for k in E.keys():
        hyperedge = list(E[k])
        ph = p[hyperedge]
        s, i = int(np.argmax(ph)), int(np.argmin(ph))
        Se, Ie = hyperedge[s], hyperedge[i]
        c = max(1, 2 * len(hyperedge) - 3)
        if m:
            edges.extend([[Se, Ie], [Ie, Se]])
            _accumulate(weights, (Se, Ie), 1.0 / c)
            _accumulate(weights, (Ie, Se), 1.0 / c)
            for mediator in hyperedge:
                if mediator != Se and mediator != Ie:
                    edges.extend([[Se, mediator], [Ie, mediator],
                                  [mediator, Se], [mediator, Ie]])
                    _accumulate(weights, (Se, mediator), 1.0 / c)
                    _accumulate(weights, (Ie, mediator), 1.0 / c)
                    _accumulate(weights, (mediator, Se), 1.0 / c)
                    _accumulate(weights, (mediator, Ie), 1.0 / c)
        else:
            edges.extend([[Se, Ie], [Ie, Se]])
            e = len(hyperedge)
            _accumulate(weights, (Se, Ie), 1.0 / e)
            _accumulate(weights, (Ie, Se), 1.0 / e)

    uniq = {tuple(e): None for e in edges}
    adj = np.zeros((V, V), dtype=np.float32)
    for (i, j) in uniq.keys():
        adj[i, j] = weights[(i, j)]
    adj = adj + np.eye(V, dtype=np.float32)

    d = adj.sum(1)
    with np.errstate(divide="ignore"):
        dhi = np.power(d, -0.5)
    dhi[np.isinf(dhi)] = 0.0
    return ((adj * dhi[:, None]) * dhi[None, :]).astype(np.float32)


# ----------------------------------------------------------------------------
# Module-equivalent forward
# ----------------------------------------------------------------------------
def hypergraph_convolution_forward(structure, H, W, bias, m=True,
                                   reapproximate=True, seed=0):
    N, a = H.shape
    b = W.shape[1]

    target_tile, vmem_limit = _tpu_tiling_config()

    a_pad = _round_up(a, 128)
    b_pad = _round_up(b, 128)
    T = min(target_tile, _round_up(N, 128))   # row/col tile for A @ HW
    N_pad = _round_up(N, T)
    tka = _choose_tile(a_pad, 512)            # exact divisor of a_pad

    # Zero-pad to lane/sublane friendly shapes (unmasked lane-dense stores).
    H_pad = jnp.zeros((N_pad, a_pad), jnp.float32).at[:N, :a].set(H)
    W_pad = jnp.zeros((a_pad, b_pad), jnp.float32).at[:a, :b].set(W)
    bias_pad = jnp.zeros((1, b_pad), jnp.float32).at[0, :b].set(
        jnp.reshape(bias, (-1,)))

    # --- Kernel 1: HW (= H @ W) once, shared by both consumers -------------
    if reapproximate:
        rng = np.random.RandomState(seed)
        rv = rng.rand(b).astype(np.float32)
        rv_pad = jnp.zeros((b_pad, 128), jnp.float32).at[:b, 0].set(
            jnp.asarray(rv))
        HW_bf16, proj = compute_hw(H_pad, W_pad, rv_pad,
                                   tm=T, tka=tka, vmem_limit=vmem_limit)
        p = np.asarray(jax.device_get(proj[:N, 0]))
        A = laplacian_dense(N, structure, p, m)
    else:
        HW_bf16 = compute_hw(H_pad, W_pad, None,
                             tm=T, tka=tka, vmem_limit=vmem_limit)
        A = np.asarray(structure, dtype=np.float32)

    # --- Block-sparse structure of A; pad/cast A on device ------------------
    nblk, colids, max_nblk = block_structure(A, N_pad, T, T)
    A_dev = jnp.zeros((N_pad, N_pad), jnp.bfloat16).at[:N, :N].set(
        jnp.asarray(A, dtype=jnp.bfloat16))

    # --- Kernel 2: block-sparse A @ HW + bias -------------------------------
    out_pad = block_sparse_matmul_bias(
        A_dev, HW_bf16, bias_pad,
        jnp.asarray(nblk, dtype=jnp.int32), jnp.asarray(colids, dtype=jnp.int32),
        tm=T, tk=T, max_nblk=max_nblk, vmem_limit=vmem_limit)
    return out_pad[:N, :b]


# ----------------------------------------------------------------------------
# Main
# ----------------------------------------------------------------------------
if __name__ == "__main__":
    key = jax.random.PRNGKey(0)
    k_h, k_w, k_b = jax.random.split(key, 3)

    # Small shapes: N=16 nodes, a=32 input features, b=8 output features.
    N, a, b = 16, 32, 8

    H = jax.random.normal(k_h, (N, a), dtype=jnp.float32)

    # reset_parameters(): uniform(-std, std) with std = 1/sqrt(b)
    std = 1.0 / math.sqrt(b)
    W = jax.random.uniform(k_w, (a, b), minval=-std, maxval=std,
                           dtype=jnp.float32)
    bias = jax.random.uniform(k_b, (b,), minval=-std, maxval=std,
                              dtype=jnp.float32)

    # Hyperedge structure: dict of hyperedge -> list of hypernodes.
    structure = {
        0: [0, 1, 2, 3],
        1: [2, 4, 5, 6],
        2: [5, 7, 8, 9, 10],
        3: [10, 11, 12],
        4: [13, 14, 15, 0],
    }

    # --- reapproximate=True path (mediator Laplacian from device projection) --
    out = hypergraph_convolution_forward(structure, H, W, bias,
                                         m=True, reapproximate=True, seed=0)
    out = jax.block_until_ready(out)
    assert out.shape == (N, b) and out.dtype == jnp.float32
    assert bool(jnp.all(jnp.isfinite(out)))

    # --- reapproximate=False path: verify kernels vs numpy reference ---------
    rng = np.random.RandomState(1)
    adj = (rng.rand(N, N) < 0.2).astype(np.float32)
    adj = np.maximum(adj, adj.T) + np.eye(N, dtype=np.float32)
    d = adj.sum(1)
    dhi = np.power(d, -0.5)
    dhi[np.isinf(dhi)] = 0.0
    A_dense = ((adj * dhi[:, None]) * dhi[None, :]).astype(np.float32)

    out2 = hypergraph_convolution_forward(A_dense, H, W, bias,
                                          m=True, reapproximate=False)
    out2 = jax.block_until_ready(out2)

    H_np = np.asarray(H)
    W_np = np.asarray(W)
    b_np = np.asarray(bias)
    ref = A_dense @ (H_np @ W_np) + b_np[None, :]
    assert np.allclose(np.asarray(out2), ref, atol=1e-1, rtol=1e-1), \
        "block-sparse A @ HW + bias mismatch vs numpy reference"

    print("KERNEL_OK")
</pallas_src>

<mosaic_0001>
module attributes {stable_mosaic.version = 11 : i64} {
  func.func @_hw_proj_kernel(%arg0: i32, %arg1: i32, %arg2: memref<128x128xf32, #tpu.memory_space<vmem>>, %arg3: memref<128x128xf32, #tpu.memory_space<vmem>>, %arg4: memref<128x128xf32, #tpu.memory_space<vmem>>, %arg5: memref<128x128xbf16, #tpu.memory_space<vmem>>, %arg6: memref<128x128xf32, #tpu.memory_space<vmem>>, %arg7: memref<128x128xf32, #tpu.memory_space<vmem>>) attributes {dimension_semantics = [#tpu.dimension_semantics<parallel>, #tpu.dimension_semantics<arbitrary>], iteration_bounds = array<i64: 1, 1>, scalar_prefetch = 0 : i64, scratch_operands = 1 : i64, tpu.core_type = #tpu.core_type<tc>, window_params = [{transform_indices = @transform_0, window_bounds = array<i64: 128, 128>}, {transform_indices = @transform_1, window_bounds = array<i64: 128, 128>}, {pipeline_mode = #tpu.pipeline_mode<synchronous>, transform_indices = @transform_2, window_bounds = array<i64: 128, 128>}, {transform_indices = @transform_3, window_bounds = array<i64: 128, 128>}, {transform_indices = @transform_4, window_bounds = array<i64: 128, 128>}]} {
    %c0_i32 = arith.constant 0 : i32
    %0 = arith.cmpi eq, %arg1, %c0_i32 : i32
    %1 = arith.extui %0 : i1 to i32
    %c0_i32_0 = arith.constant 0 : i32
    %2 = arith.cmpi ne, %1, %c0_i32_0 : i32
    scf.if %2 {
      %cst_10 = arith.constant 0.000000e+00 : f32
      %12 = vector.broadcast %cst_10 : f32 to vector<128x128xf32>
      %c0_11 = arith.constant 0 : index
      %c0_12 = arith.constant 0 : index
      %13 = vector.load %arg7[%c0_11, %c0_12] : memref<128x128xf32, #tpu.memory_space<vmem>>, vector<128x128xf32>
      tpu.vector_store %arg7[%c0_11, %c0_12], %12 {strides = array<i32>} : memref<128x128xf32, #tpu.memory_space<vmem>>, vector<128x128xf32>,
    } else {
    }
    %c0 = arith.constant 0 : index
    %c0_1 = arith.constant 0 : index
    %3 = vector.load %arg7[%c0, %c0_1] : memref<128x128xf32, #tpu.memory_space<vmem>>, vector<128x128xf32>
    %c0_2 = arith.constant 0 : index
    %c0_3 = arith.constant 0 : index
    %4 = vector.load %arg2[%c0_2, %c0_3] : memref<128x128xf32, #tpu.memory_space<vmem>>, vector<128x128xf32>
    %c0_4 = arith.constant 0 : index
    %c0_5 = arith.constant 0 : index
    %5 = vector.load %arg3[%c0_4, %c0_5] : memref<128x128xf32, #tpu.memory_space<vmem>>, vector<128x128xf32>
    %cst = arith.constant dense<0.000000e+00> : vector<128x128xf32>
    %6 = tpu.matmul %4, %5, %cst {dimension_numbers = #tpu.dot_dimension_numbers<[1], [0], [0], [1], [0, 0, 1, 1], [], []>} : vector<128x128xf32>, vector<128x128xf32>, vector<128x128xf32> -> vector<128x128xf32>
    %7 = arith.addf %3, %6 : vector<128x128xf32>
    %c0_6 = arith.constant 0 : index
    %c0_7 = arith.constant 0 : index
    %8 = vector.load %arg7[%c0_6, %c0_7] : memref<128x128xf32, #tpu.memory_space<vmem>>, vector<128x128xf32>
    tpu.vector_store %arg7[%c0_6, %c0_7], %7 {strides = array<i32>} : memref<128x128xf32, #tpu.memory_space<vmem>>, vector<128x128xf32>,
    %c0_i32_8 = arith.constant 0 : i32
    %9 = arith.cmpi eq, %arg1, %c0_i32_8 : i32
    %10 = arith.extui %9 : i1 to i32
    %c0_i32_9 = arith.constant 0 : i32
    %11 = arith.cmpi ne, %10, %c0_i32_9 : i32
    scf.if %11 {
      %c0_10 = arith.constant 0 : index
      %c0_11 = arith.constant 0 : index
      %12 = vector.load %arg7[%c0_10, %c0_11] : memref<128x128xf32, #tpu.memory_space<vmem>>, vector<128x128xf32>
      %13 = arith.truncf %12 : vector<128x128xf32> to vector<128x128xbf16>
      %c0_12 = arith.constant 0 : index
      %c0_13 = arith.constant 0 : index
      %14 = vector.load %arg5[%c0_12, %c0_13] : memref<128x128xbf16, #tpu.memory_space<vmem>>, vector<128x128xbf16>
      tpu.vector_store %arg5[%c0_12, %c0_13], %13 {strides = array<i32>} : memref<128x128xbf16, #tpu.memory_space<vmem>>, vector<128x128xbf16>,
      %c0_14 = arith.constant 0 : index
      %c0_15 = arith.constant 0 : index
      %15 = vector.load %arg7[%c0_14, %c0_15] : memref<128x128xf32, #tpu.memory_space<vmem>>, vector<128x128xf32>
      %c0_16 = arith.constant 0 : index
      %c0_17 = arith.constant 0 : index
      %16 = vector.load %arg4[%c0_16, %c0_17] : memref<128x128xf32, #tpu.memory_space<vmem>>, vector<128x128xf32>
      %cst_18 = arith.constant dense<0.000000e+00> : vector<128x128xf32>
      %17 = tpu.matmul %15, %16, %cst_18 {dimension_numbers = #tpu.dot_dimension_numbers<[1], [0], [0], [1], [0, 0, 1, 1], [], []>} : vector<128x128xf32>, vector<128x128xf32>, vector<128x128xf32> -> vector<128x128xf32>
      %c0_19 = arith.constant 0 : index
      %c0_20 = arith.constant 0 : index
      %18 = vector.load %arg6[%c0_19, %c0_20] : memref<128x128xf32, #tpu.memory_space<vmem>>, vector<128x128xf32>
      tpu.vector_store %arg6[%c0_19, %c0_20], %17 {strides = array<i32>} : memref<128x128xf32, #tpu.memory_space<vmem>>, vector<128x128xf32>,
    } else {
    }
    return
  }
  func.func @transform_0(%arg0: i32, %arg1: i32) -> (i32, i32) {
    %c0_i32 = arith.constant 0 : i32
    return %arg0, %arg1 : i32, i32
  }
  func.func @transform_1(%arg0: i32, %arg1: i32) -> (i32, i32) {
    %c0_i32 = arith.constant 0 : i32
    %c0_i32_0 = arith.constant 0 : i32
    return %arg1, %c0_i32 : i32, i32
  }
  func.func @transform_2(%arg0: i32, %arg1: i32) -> (i32, i32) {
    %c0_i32 = arith.constant 0 : i32
    %c0_i32_0 = arith.constant 0 : i32
    %c0_i32_1 = arith.constant 0 : i32
    return %c0_i32, %c0_i32_0 : i32, i32
  }
  func.func @transform_3(%arg0: i32, %arg1: i32) -> (i32, i32) {
    %c0_i32 = arith.constant 0 : i32
    %c0_i32_0 = arith.constant 0 : i32
    return %arg0, %c0_i32 : i32, i32
  }
  func.func @transform_4(%arg0: i32, %arg1: i32) -> (i32, i32) {
    %c0_i32 = arith.constant 0 : i32
    %c0_i32_0 = arith.constant 0 : i32
    return %arg0, %c0_i32 : i32, i32
  }
}

</mosaic_0001>

<bundles_post_ra>
// kernel: tpu_custom_call.1
= control target key start
LH: loop header
LB: loop body
LE: loop exit
PB: predicated region body
PF: predicated region fallthrough
CT: control target
= control target key end

     0   :  { %10 = vsyncpa [#allocation4], 0  ;;  %s1189_s0 = inlined_call_operand.hbm [shape: f32[128,128], index: 0, kind: input, shape index: {}]   ;;  %s1190_s1 = inlined_call_operand.hbm [shape: f32[128,128], index: 1, kind: input, shape index: {}]   ;;  %s1191_s2 = inlined_call_operand.hbm [shape: f32[128,128], index: 2, kind: input, shape index: {}]   ;;  %s1192_s3 = inlined_call_operand.hbm [shape: bf16[128,128], index: 3, kind: output, shape index: {0}]   ;;  %s1193_s4 = inlined_call_operand.hbm [shape: f32[128,128], index: 4, kind: output, shape index: {1}]  }
   0x1   :  { %11 = vsyncpa [#allocation7], 0 }
   0x2   :  { %12 = vsyncpa [#allocation5], 0 }
   0x3   :  { %13 = vsyncpa [#allocation11], 0  ;;  %s1076_s15 = smov [#allocation6]   ;;  %s1077_s17 = smov [#allocation3]  }
   0x4   :  { %s31_s16 = sshll.u32 %s1076_s15, 4  ;;  %s19_s18 = sshll.u32 %s1077_s17, 4  ;;  %s32_s16 = int_to_ptr.vmem [resolvable:$true] %s31_s16  ;;  %s1110_s18 = int_to_ptr.vmem [resolvable:$true] %s19_s18 }
   0x5   :  { %s958_s21 = scalar_lea.hbm %s1190_s1, 2048 }
   0x6   :  { %p959_p0 = scmp.ne.s32.totalorder %s1190_s1, %s958_s21  ;;  %p962_p1 = scmp.lt.u32.totalorder %s958_s21, %s1190_s1 }
   0x8   :  { %p964_p2 = pnand %p962_p1, %p959_p0 }
   0xa   :  { %967 = shalt.err (!%p964_p2)
}
   0xb   :  { %s968_s26 = scalar_lea.vmem %s32_s16, 2048  ;;  %p973_p4 = scmp.lt.s32.totalorder %s32_s16, %s32_s16 }
   0xc   :  { %p969_p3 = scmp.ne.s32.totalorder %s32_s16, %s968_s26  ;;  %p974_p5 = scmp.lt.s32.totalorder %s968_s26, %s968_s26 }
   0xe   :  { %p975_p6 = por %p974_p5, %p973_p4 }
  0x10   :  { %p976_p7 = pnand %p975_p6, %p969_p3 }
  0x12   :  { %979 = shalt.err (!%p976_p7)
}
  0x13   :  { %s1078_s27 = smov 128   ;;  %s1079_s28 = smov 8  }
  0x14   :  { %37 = dma.hbm_to_vmem [thread:$0]  %s1190_s1, 2048, %s32_s16, [#allocation7], %s1078_s27, %s1078_s27, %s1079_s28  }
  0x15   :  { %s980_s7 = scalar_lea.hbm %s1189_s0, 2048 }
  0x16   :  { %p981_p8 = scmp.ne.s32.totalorder %s1189_s0, %s980_s7  ;;  %p984_p9 = scmp.lt.u32.totalorder %s980_s7, %s1189_s0 }
  0x18   :  { %p986_p10 = pnand %p984_p9, %p981_p8 }
  0x1a   :  { %989 = shalt.err (!%p986_p10)
}
  0x1b   :  { %s990_s12 = scalar_lea.vmem %s1110_s18, 2048  ;;  %p995_p12 = scmp.lt.s32.totalorder %s1110_s18, %s1110_s18 }
  0x1c   :  { %p991_p11 = scmp.ne.s32.totalorder %s1110_s18, %s990_s12  ;;  %p996_p13 = scmp.lt.s32.totalorder %s990_s12, %s990_s12 }
  0x1e   :  { %p997_p0 = por %p996_p13, %p995_p12 }
  0x20   :  { %p998_p1 = pnand %p997_p0, %p991_p11 }
  0x22   :  { %1001 = shalt.err (!%p998_p1)
}
  0x23   :  { %25 = dma.hbm_to_vmem [thread:$0]  %s1189_s0, 2048, %s1110_s18, [#allocation4], %s1078_s27, %s1078_s27, %s1079_s28  }
  0x24   :  { %s1080_s14 = smov [#allocation8]   ;;  %s1002_s19 = scalar_lea.hbm %s1191_s2, 2048 }
  0x25   :  { %s43_s15 = sshll.u32 %s1080_s14, 4  ;;  %p1003_p2 = scmp.ne.s32.totalorder %s1191_s2, %s1002_s19  ;;  %s44_s15 = int_to_ptr.vmem [resolvable:$true] %s43_s15 }
  0x26   :  { %p1006_p3 = scmp.lt.u32.totalorder %s1002_s19, %s1191_s2 }
  0x28   :  { %p1008_p4 = pnand %p1006_p3, %p1003_p2 }
  0x2a   :  { %1011 = shalt.err (!%p1008_p4)
}
  0x2b   :  { %s1012_s24 = scalar_lea.vmem %s44_s15, 2048  ;;  %p1017_p6 = scmp.lt.s32.totalorder %s44_s15, %s44_s15 }
  0x2c   :  { %p1013_p5 = scmp.ne.s32.totalorder %s44_s15, %s1012_s24  ;;  %p1018_p7 = scmp.lt.s32.totalorder %s1012_s24, %s1012_s24 }
  0x2e   :  { %p1019_p8 = por %p1018_p7, %p1017_p6 }
  0x30   :  { %p1020_p9 = pnand %p1019_p8, %p1013_p5 }
  0x32   :  { %1023 = shalt.err (!%p1020_p9)
}
  0x33   :  { %49 = dma.hbm_to_vmem [thread:$0]  %s1191_s2, 2048, %s44_s15, [#allocation7], %s1078_s27, %s1078_s27, %s1079_s28  }
  0x34   :  { %1068 = dma.done.wait [#allocation4], 2048  }
  0x35   :  { %1069 = vsyncadd [#allocation4], 4294965248 }
  0x36   :  { %1070 = dma.done.wait [#allocation7], 4096  }
  0x37   :  { %1071 = vsyncadd [#allocation7], 4294963200  ;;  %v111_v0 = vld [vmem:[#allocation6] sm:$0xff]  ;;  %v112_v1 = vld [vmem:[#allocation6 + $0x8] sm:$0xff]  ;;  %s1081_s2 = smov [#allocation9]  }
  0x38   :  { %v113_v2 = vld [vmem:[#allocation6 + $0x10] sm:$0xff]  ;;  %v885_v3 = vpack.c.bf16 %v112_v1, %v111_v0  ;;  %v114_v4 = vld [vmem:[#allocation6 + $0x18] sm:$0xff]  ;;  %v115_v6 = vld [vmem:[#allocation6 + $0x20] sm:$0xff]  ;;  %s601_s25 = sshll.u32 %s1081_s2, 4  ;;  %s602_s25 = int_to_ptr.vmem [resolvable:$true] %s601_s25 }
  0x39   :  { %v889_v5 = vpack.c.bf16 %v114_v4, %v113_v2  ;;  %v116_v7 = vld [vmem:[#allocation6 + $0x28] sm:$0xff]  ;;  %v95_v9 = vld [vmem:[#allocation3] sm:$0xff]  ;;  %v117_v10 = vld [vmem:[#allocation6 + $0x30] sm:$0xff]  ;;  %s1024_s26 = scalar_lea.vmem %s602_s25, 1024  ;;  %p1029_p11 = scmp.lt.s32.totalorder %s602_s25, %s602_s25 }
  0x3a   :  { %886 = vmatprep.subr.bf16.mxu0 %v885_v3  ;;  %v893_v8 = vpack.c.bf16 %v116_v7, %v115_v6  ;;  %v118_v11 = vld [vmem:[#allocation6 + $0x38] sm:$0xff]  ;;  %805 = vmatprep.mubr.f32.mxu0 %v95_v9  ;;  %v119_v13 = vld [vmem:[#allocation6 + $0x40] sm:$0xff]  ;;  %v120_v14 = vld [vmem:[#allocation6 + $0x48] sm:$0xff]  ;;  %p1025_p10 = scmp.ne.s32.totalorder %s602_s25, %s1024_s26  ;;  %p1030_p12 = scmp.lt.s32.totalorder %s1024_s26, %s1024_s26 }
  0x3b   :  { %888 = vmatpush3.bf16.msra.mxu0 %v885_v3  ;;  %v897_v12 = vpack.c.bf16 %v118_v11, %v117_v10  ;;  %v419_v15 = vld [vmem:[#allocation8] sm:$0xff]  ;;  %v420_v16 = vld [vmem:[#allocation8 + $0x8] sm:$0xff]  ;;  %v421_v17 = vld [vmem:[#allocation8 + $0x10] sm:$0xff]  ;;  %v901_v21 = vpack.c.bf16 %v120_v14, %v119_v13 }
  0x3c   :  { %890 = vmatprep.subr.bf16.mxu0 %v889_v5  ;;  %v422_v18 = vld [vmem:[#allocation8 + $0x18] sm:$0xff]  ;;  %v917_v19 = vpack.c.bf16 %v420_v16, %v419_v15  ;;  %v423_v22 = vld [vmem:[#allocation8 + $0x20] sm:$0xff]  ;;  %v424_v23 = vld [vmem:[#allocation8 + $0x28] sm:$0xff]  ;;  %p1031_p13 = por %p1030_p12, %p1029_p11 }
  0x3d   :  { %v921_v20 = vpack.c.bf16 %v422_v18, %v421_v17  ;;  %v121_v24 = vld [vmem:[#allocation6 + $0x50] sm:$0xff]  ;;  %v122_v25 = vld [vmem:[#allocation6 + $0x58] sm:$0xff]  ;;  %v925_v26 = vpack.c.bf16 %v424_v23, %v423_v22  ;;  %v123_v30 = vld [vmem:[#allocation6 + $0x60] sm:$0xff] }
  0x3e   :  { %918 = vmatprep.subr.bf16.mxu1 %v917_v19  ;;  %v905_v27 = vpack.c.bf16 %v122_v25, %v121_v24  ;;  %v425_v28 = vld [vmem:[#allocation8 + $0x30] sm:$0xff]  ;;  %v426_v29 = vld [vmem:[#allocation8 + $0x38] sm:$0xff]  ;;  %v124_v31 = vld [vmem:[#allocation6 + $0x68] sm:$0xff]  ;;  %p1032_p0 = pnand %p1031_p13, %p1025_p10 }
  0x3f   :  { %892 = vmatpush3.bf16.msra.mxu0 %v889_v5  ;;  %920 = vmatpush3.bf16.msra.mxu1 %v917_v19  ;;  %v929_v32 = vpack.c.bf16 %v426_v29, %v425_v28  ;;  %v909_v33 = vpack.c.bf16 %v124_v31, %v123_v30  ;;  %v427_v34 = vld [vmem:[#allocation8 + $0x40] sm:$0xff]  ;;  %v428_v35 = vld [vmem:[#allocation8 + $0x48] sm:$0xff]  ;;  %v125_v36 = vld [vmem:[#allocation6 + $0x70] sm:$0xff] }
  0x40   :  { %894 = vmatprep.subr.bf16.mxu0 %v893_v8  ;;  %922 = vmatprep.subr.bf16.mxu1 %v921_v20  ;;  %v126_v37 = vld [vmem:[#allocation6 + $0x78] sm:$0xff]  ;;  %v933_v38 = vpack.c.bf16 %v428_v35, %v427_v34  ;;  %v429_v40 = vld [vmem:[#allocation8 + $0x50] sm:$0xff]  ;;  %v431_v43 = vld [vmem:[#allocation8 + $0x60] sm:$0xff] }
  0x41   :  { %v913_v39 = vpack.c.bf16 %v126_v37, %v125_v36  ;;  %v430_v41 = vld [vmem:[#allocation8 + $0x58] sm:$0xff]  ;;  %v432_v44 = vld [vmem:[#allocation8 + $0x68] sm:$0xff]  ;;  %v97_v47 = vld [vmem:[#allocation3 + $0x10] sm:$0xff] }
  0x42   :  { %v937_v42 = vpack.c.bf16 %v430_v41, %v429_v40  ;;  %v96_v45 = vld [vmem:[#allocation3 + $0x8] sm:$0xff]  ;;  %v941_v46 = vpack.c.bf16 %v432_v44, %v431_v43  ;;  %v433_v48 = vld [vmem:[#allocation8 + $0x70] sm:$0xff]  ;;  %v434_v49 = vld [vmem:[#allocation8 + $0x78] sm:$0xff] }
  0x43   :  { %896 = vmatpush3.bf16.msra.mxu0 %v893_v8  ;;  %924 = vmatpush3.bf16.msra.mxu1 %v921_v20  ;;  %v98_v50 = vld [vmem:[#allocation3 + $0x18] sm:$0xff]  ;;  %v945_v51 = vpack.c.bf16 %v434_v49, %v433_v48  ;;  %v99_v52 = vld [vmem:[#allocation3 + $0x20] sm:$0xff]  ;;  %v100_v53 = vld [vmem:[#allocation3 + $0x28] sm:$0xff] }
  0x44   :  { %898 = vmatprep.subr.bf16.mxu0 %v897_v12  ;;  %926 = vmatprep.subr.bf16.mxu1 %v925_v26  ;;  %v101_v54 = vld [vmem:[#allocation3 + $0x30] sm:$0xff]  ;;  %v102_v55 = vld [vmem:[#allocation3 + $0x38] sm:$0xff]  ;;  %v103_v56 = vld [vmem:[#allocation3 + $0x40] sm:$0xff] }
  0x45   :  { %v104_v57 = vld [vmem:[#allocation3 + $0x48] sm:$0xff]  ;;  %v105_v58 = vld [vmem:[#allocation3 + $0x50] sm:$0xff]  ;;  %v106_v59 = vld [vmem:[#allocation3 + $0x58] sm:$0xff] }
  0x46   :  { %v107_v60 = vld [vmem:[#allocation3 + $0x60] sm:$0xff]  ;;  %v108_v61 = vld [vmem:[#allocation3 + $0x68] sm:$0xff]  ;;  %v109_v62 = vld [vmem:[#allocation3 + $0x70] sm:$0xff] }
  0x47   :  { %900 = vmatpush3.bf16.msra.mxu0 %v897_v12  ;;  %928 = vmatpush3.bf16.msra.mxu1 %v925_v26  ;;  %v110_v63 = vld [vmem:[#allocation3 + $0x78] sm:$0xff] }
  0x48   :  { %902 = vmatprep.subr.bf16.mxu0 %v901_v21  ;;  %930 = vmatprep.subr.bf16.mxu1 %v929_v32 }
  0x4b   :  { %904 = vmatpush3.bf16.msra.mxu0 %v901_v21  ;;  %932 = vmatpush3.bf16.msra.mxu1 %v929_v32 }
  0x4c   :  { %906 = vmatprep.subr.bf16.mxu0 %v905_v27  ;;  %934 = vmatprep.subr.bf16.mxu1 %v933_v38 }
  0x4f   :  { %908 = vmatpush3.bf16.msra.mxu0 %v905_v27  ;;  %936 = vmatpush3.bf16.msra.mxu1 %v933_v38 }
  0x50   :  { %910 = vmatprep.subr.bf16.mxu0 %v909_v33  ;;  %938 = vmatprep.subr.bf16.mxu1 %v937_v42 }
  0x53   :  { %912 = vmatpush3.bf16.msra.mxu0 %v909_v33  ;;  %940 = vmatpush3.bf16.msra.mxu1 %v937_v42 }
  0x54   :  { %914 = vmatprep.subr.bf16.mxu0 %v913_v39  ;;  %942 = vmatprep.subr.bf16.mxu1 %v941_v46 }
  0x57   :  { %916 = vmatpush3.bf16.msra.mxu0 %v913_v39  ;;  %944 = vmatpush3.bf16.msra.mxu1 %v941_v46 }
  0x58   :  { %946 = vmatprep.subr.bf16.mxu1 %v945_v51 }
  0x5a   :  { %806 = vmatmul.mubr.f32.vlgmr.msra.gmra.mrb[0].mxu0 %v96_v45 }
  0x5b   :  { %808 = vmatprep.mubr.f32.mxu0 %v97_v47  ;;  %948 = vmatpush3.bf16.msra.mxu1 %v945_v51 }
  0x5e   :  { %809 = vmatmul.mubr.f32.gmra.mrb[2].mxu0 %v98_v50 }
  0x5f   :  { %811 = vmatprep.mubr.f32.mxu0 %v99_v52 }
  0x62   :  { %812 = vmatmul.mubr.f32.gmra.mrb[4].mxu0 %v100_v53 }
  0x63   :  { %814 = vmatprep.mubr.f32.mxu0 %v101_v54 }
  0x66   :  { %815 = vmatmul.mubr.f32.gmra.mrb[6].mxu0 %v102_v55 }
  0x67   :  { %817 = vmatprep.mubr.f32.mxu0 %v103_v56 }
  0x6a   :  { %818 = vmatmul.mubr.f32.gmra.mrb[8].mxu0 %v104_v57 }
  0x6b   :  { %820 = vmatprep.mubr.f32.mxu0 %v105_v58 }
  0x6e   :  { %821 = vmatmul.mubr.f32.gmra.mrb[10].mxu0 %v106_v59 }
  0x6f   :  { %823 = vmatprep.mubr.f32.mxu0 %v107_v60 }
  0x72   :  { %824 = vmatmul.mubr.f32.gmra.mrb[12].mxu0 %v108_v61 }
  0x73   :  { %826 = vmatprep.mubr.f32.mxu0 %v109_v62 }
  0x76   :  { %827 = vmatmul.mubr.f32.gmra.mrb[14].mxu0 %v110_v63 }
 0x12d   :  { %v807_v0 = vpop.f32.mrb[0].mxu0 }
 0x12e   :  { %v193_v1 = vpop.f32.mrb[1].mxu0 }
 0x12f   :  { %v665_v2 = vpack.c.bf16 %v807_v0, %v193_v1  ;;  %861 = vmatprep.mubr.f32.mxu1 %v193_v1 }
 0x130   :  { %862 = vmatmul.mubr.f32.vlgmr.msra.gmra.mrb[0].mxu1 %v807_v0 }
 0x131   :  { %666 = vst [vmem:[#allocation9] sm:$0xff] %v665_v2   ;;  %v810_v3 = vpop.f32.mrb[2].mxu0 }
 0x132   :  { %v203_v4 = vpop.f32.mrb[3].mxu0 }
 0x133   :  { %v670_v5 = vpack.c.bf16 %v810_v3, %v203_v4  ;;  %864 = vmatprep.mubr.f32.mxu1 %v203_v4 }
 0x134   :  { %865 = vmatmul.mubr.f32.gmra.mrb[2].mxu1 %v810_v3 }
 0x135   :  { %702 = vst [vmem:[#allocation9 + $0x8] sm:$0xff] %v670_v5   ;;  %v813_v6 = vpop.f32.mrb[4].mxu0 }
 0x136   :  { %v213_v7 = vpop.f32.mrb[5].mxu0 }
 0x137   :  { %v675_v8 = vpack.c.bf16 %v813_v6, %v213_v7  ;;  %867 = vmatprep.mubr.f32.mxu1 %v213_v7 }
 0x138   :  { %868 = vmatmul.mubr.f32.gmra.mrb[4].mxu1 %v813_v6 }
 0x139   :  { %703 = vst [vmem:[#allocation9 + $0x10] sm:$0xff] %v675_v8   ;;  %v816_v9 = vpop.f32.mrb[6].mxu0 }
 0x13a   :  { %v223_v10 = vpop.f32.mrb[7].mxu0 }
 0x13b   :  { %v680_v11 = vpack.c.bf16 %v816_v9, %v223_v10  ;;  %870 = vmatprep.mubr.f32.mxu1 %v223_v10 }
 0x13c   :  { %871 = vmatmul.mubr.f32.gmra.mrb[6].mxu1 %v816_v9 }
 0x13d   :  { %704 = vst [vmem:[#allocation9 + $0x18] sm:$0xff] %v680_v11   ;;  %v819_v12 = vpop.f32.mrb[8].mxu0 }
 0x13e   :  { %v233_v13 = vpop.f32.mrb[9].mxu0 }
 0x13f   :  { %v685_v14 = vpack.c.bf16 %v819_v12, %v233_v13  ;;  %873 = vmatprep.mubr.f32.mxu1 %v233_v13 }
 0x140   :  { %874 = vmatmul.mubr.f32.gmra.mrb[8].mxu1 %v819_v12 }
 0x141   :  { %705 = vst [vmem:[#allocation9 + $0x20] sm:$0xff] %v685_v14   ;;  %v822_v15 = vpop.f32.mrb[10].mxu0 }
 0x142   :  { %v243_v16 = vpop.f32.mrb[11].mxu0 }
 0x143   :  { %v690_v17 = vpack.c.bf16 %v822_v15, %v243_v16  ;;  %876 = vmatprep.mubr.f32.mxu1 %v243_v16 }
 0x144   :  { %877 = vmatmul.mubr.f32.gmra.mrb[10].mxu1 %v822_v15 }
 0x145   :  { %706 = vst [vmem:[#allocation9 + $0x28] sm:$0xff] %v690_v17   ;;  %v825_v18 = vpop.f32.mrb[12].mxu0 }
 0x146   :  { %v253_v19 = vpop.f32.mrb[13].mxu0 }
 0x147   :  { %v695_v20 = vpack.c.bf16 %v825_v18, %v253_v19  ;;  %879 = vmatprep.mubr.f32.mxu1 %v253_v19 }
 0x148   :  { %880 = vmatmul.mubr.f32.gmra.mrb[12].mxu1 %v825_v18 }
 0x149   :  { %707 = vst [vmem:[#allocation9 + $0x30] sm:$0xff] %v695_v20   ;;  %v828_v21 = vpop.f32.mrb[14].mxu0 }
 0x14a   :  { %v263_v22 = vpop.f32.mrb[15].mxu0 }
 0x14b   :  { %v700_v23 = vpack.c.bf16 %v828_v21, %v263_v22  ;;  %882 = vmatprep.mubr.f32.mxu1 %v263_v22 }
 0x14c   :  { %883 = vmatmul.mubr.f32.gmra.mrb[14].mxu1 %v828_v21 }
 0x14d   :  { %708 = vst [vmem:[#allocation9 + $0x38] sm:$0xff] %v700_v23  }
 0x14e   :  { %1035 = shalt.err (!%p1032_p0)
}
 0x14f   :  { %s1036_s5 = scalar_lea.hbm %s1192_s3, 1024 }
 0x150   :  { %p1037_p1 = scmp.ne.s32.totalorder %s1192_s3, %s1036_s5  ;;  %p1040_p2 = scmp.lt.u32.totalorder %s1036_s5, %s1192_s3 }
 0x152   :  { %p1042_p3 = pnand %p1040_p2, %p1037_p1 }
 0x154   :  { %1045 = shalt.err (!%p1042_p3)
}
 0x155   :  { %s1082_s10 = smov 64   ;;  %s1083_s11 = smov 4  }
 0x156   :  { %607 = dma.vmem_to_hbm [thread:$0]  %s602_s25, 1024, %s1192_s3, [#allocation5], %s1082_s10, %s1082_s10, %s1083_s11  }
 0x157   :  { %s1084_s3 = smov [#allocation10]  }
 0x158   :  { %s613_s13 = sshll.u32 %s1084_s3, 4  ;;  %s614_s13 = int_to_ptr.vmem [resolvable:$true] %s613_s13 }
 0x159   :  { %s1046_s14 = scalar_lea.vmem %s614_s13, 2048  ;;  %p1051_p5 = scmp.lt.s32.totalorder %s614_s13, %s614_s13 }
 0x15a   :  { %p1047_p4 = scmp.ne.s32.totalorder %s614_s13, %s1046_s14  ;;  %p1052_p6 = scmp.lt.s32.totalorder %s1046_s14, %s1046_s14 }
 0x15c   :  { %p1053_p7 = por %p1052_p6, %p1051_p5 }
 0x15e   :  { %p1054_p8 = pnand %p1053_p7, %p1047_p4 }
 0x203   :  { %v863_v24 = vpop.f32.mrb[0].mxu1 }
 0x204   :  { %581 = vst [vmem:[#allocation10 + $0x8] sm:$0xff] %v863_v24  ;;  %v501_v25 = vpop.f32.mrb[1].mxu1 }
 0x205   :  { %580 = vst [vmem:[#allocation10] sm:$0xff] %v501_v25 }
 0x207   :  { %v866_v26 = vpop.f32.mrb[2].mxu1 }
 0x208   :  { %583 = vst [vmem:[#allocation10 + $0x18] sm:$0xff] %v866_v26  ;;  %v511_v27 = vpop.f32.mrb[3].mxu1 }
 0x209   :  { %582 = vst [vmem:[#allocation10 + $0x10] sm:$0xff] %v511_v27 }
 0x20b   :  { %v869_v28 = vpop.f32.mrb[4].mxu1 }
 0x20c   :  { %585 = vst [vmem:[#allocation10 + $0x28] sm:$0xff] %v869_v28  ;;  %v521_v29 = vpop.f32.mrb[5].mxu1 }
 0x20d   :  { %584 = vst [vmem:[#allocation10 + $0x20] sm:$0xff] %v521_v29 }
 0x20f   :  { %v872_v30 = vpop.f32.mrb[6].mxu1 }
 0x210   :  { %587 = vst [vmem:[#allocation10 + $0x38] sm:$0xff] %v872_v30  ;;  %v531_v31 = vpop.f32.mrb[7].mxu1 }
 0x211   :  { %586 = vst [vmem:[#allocation10 + $0x30] sm:$0xff] %v531_v31 }
 0x213   :  { %v875_v32 = vpop.f32.mrb[8].mxu1 }
 0x214   :  { %589 = vst [vmem:[#allocation10 + $0x48] sm:$0xff] %v875_v32  ;;  %v541_v33 = vpop.f32.mrb[9].mxu1 }
 0x215   :  { %588 = vst [vmem:[#allocation10 + $0x40] sm:$0xff] %v541_v33 }
 0x217   :  { %v878_v34 = vpop.f32.mrb[10].mxu1 }
 0x218   :  { %591 = vst [vmem:[#allocation10 + $0x58] sm:$0xff] %v878_v34  ;;  %v551_v35 = vpop.f32.mrb[11].mxu1 }
 0x219   :  { %590 = vst [vmem:[#allocation10 + $0x50] sm:$0xff] %v551_v35 }
 0x21b   :  { %v881_v36 = vpop.f32.mrb[12].mxu1 }
 0x21c   :  { %593 = vst [vmem:[#allocation10 + $0x68] sm:$0xff] %v881_v36  ;;  %v561_v37 = vpop.f32.mrb[13].mxu1 }
 0x21d   :  { %592 = vst [vmem:[#allocation10 + $0x60] sm:$0xff] %v561_v37 }
 0x21f   :  { %v884_v38 = vpop.f32.mrb[14].mxu1 }
 0x220   :  { %595 = vst [vmem:[#allocation10 + $0x78] sm:$0xff] %v884_v38  ;;  %v571_v39 = vpop.f32.mrb[15].mxu1 }
 0x221   :  { %594 = vst [vmem:[#allocation10 + $0x70] sm:$0xff] %v571_v39 }
 0x222   :  { %1057 = shalt.err (!%p1054_p8)
}
 0x223   :  { %s1058_s17 = scalar_lea.hbm %s1193_s4, 2048 }
 0x224   :  { %p1059_p9 = scmp.ne.s32.totalorder %s1193_s4, %s1058_s17  ;;  %p1062_p10 = scmp.lt.u32.totalorder %s1058_s17, %s1193_s4 }
 0x226   :  { %p1064_p11 = pnand %p1062_p10, %p1059_p9 }
 0x228   :  { %1067 = shalt.err (!%p1064_p11)
}
 0x229   :  { %619 = dma.vmem_to_hbm [thread:$0]  %s614_s13, 2048, %s1193_s4, [#allocation11], %s1078_s27, %s1078_s27, %s1079_s28  }
 0x22a   :  { %1072 = dma.done.wait [#allocation5], 1024  }
 0x22b   :  { %1073 = vsyncadd [#allocation5], 4294966272 }
 0x22c   :  { %1074 = dma.done.wait [#allocation11], 2048  }
 0x22d   :  { %1075 = vsyncadd [#allocation11], 4294965248 }
 0x22e   :  { %626 = vsyncpa [#allocation4], 1 }
 0x22f   :  { %627 = vsyncpa [#allocation7], 1 }
 0x230   :  { %628 = vsyncpa [#allocation5], 1 }
 0x231   :  { %629 = vsyncpa [#allocation11], 1 }

</bundles_post_ra>
